<compile_context>
chip_gen: v7x
topology: tpu7x:2x2x1
jax: 0.10.0
libtpu: 0.0.40
codegen_flags: <defaults>
</compile_context>

<pallas_src>
import functools

import jax
import jax.numpy as jnp
from jax.experimental import pallas as pl
from jax.experimental.pallas import tpu as pltpu


def _round_up(n, m):
    return ((n + m - 1) // m) * m


def _bf16_elementwise_ok():
    """bf16 VPU elementwise path only helps (and only exists) on v6e and later."""
    try:
        d = jax.devices()[0]
        if d.platform != "tpu":
            return False
        kind = d.device_kind.lower()
        return not any(v in kind for v in ("v2", "v3", "v4", "v5"))
    except Exception:
        return False


# ---------------------------------------------------------------------------
# Fused single-pass kernel: whole (tr, H*W) row-tile is resident in VMEM.
# ---------------------------------------------------------------------------
def _frn_fused_kernel(x_ref, p_ref, o_ref, *, inv_hw, eps, lp_compute):
    x = x_ref[...]                                   # (TR, COLS), input dtype
    xf = x.astype(jnp.float32)
    # nu2 = sum(x^2) / HW.  Block last dim == full array dim, so Mosaic masks
    # the non-128-multiple lane tail in the reduction; partial final row
    # blocks produce garbage rows that are dropped on store.
    nu2 = jnp.sum(xf * xf, axis=-1, keepdims=True) * inv_hw        # (TR, 1)
    inv = jax.lax.rsqrt(nu2 + eps)                                  # EUP slot
    g = p_ref[:, 0:1]
    b = p_ref[:, 1:2]
    t = p_ref[:, 2:3]
    scale = g * inv                                  # fold gamma into the scale
    if lp_compute:
        dt = o_ref.dtype
        y = x * scale.astype(dt) + b.astype(dt)
        o_ref[...] = jnp.maximum(y, t.astype(dt))
    else:
        o_ref[...] = jnp.maximum(xf * scale + b, t).astype(o_ref.dtype)


# ---------------------------------------------------------------------------
# Two-pass path for very large H*W (a single row-tile would not fit VMEM).
# Pass 1: per-row sum-of-squares accumulated over column chunks -> scale.
# Pass 2: elementwise normalize/affine/max.
# ---------------------------------------------------------------------------
def _frn_scale_kernel(x_ref, p_ref, s_ref, acc_ref, *, inv_hw, eps, cols, tc):
    j = pl.program_id(1)

    @pl.when(j == 0)
    def _():
        acc_ref[...] = jnp.zeros_like(acc_ref)

    xf = x_ref[...].astype(jnp.float32)
    if cols % tc != 0:
        # Mask the out-of-range lanes of the partial final column chunk
        # (their VMEM contents are undefined, not zero).
        valid = cols - j * tc
        lane = jax.lax.broadcasted_iota(jnp.int32, xf.shape, 1)
        xf = jnp.where(lane < valid, xf, 0.0)
    acc_ref[...] += jnp.sum(xf * xf, axis=-1, keepdims=True)

    @pl.when(j == pl.num_programs(1) - 1)
    def _():
        inv = jax.lax.rsqrt(acc_ref[...] * inv_hw + eps)
        s_ref[...] = p_ref[:, 0:1] * inv             # gamma folded into scale


def _frn_norm_kernel(x_ref, s_ref, p_ref, o_ref, *, lp_compute):
    x = x_ref[...]
    scale = s_ref[...]                               # (TR, 1) f32, includes gamma
    b = p_ref[:, 1:2]
    t = p_ref[:, 2:3]
    if lp_compute:
        dt = o_ref.dtype
        o_ref[...] = jnp.maximum(x * scale.astype(dt) + b.astype(dt), t.astype(dt))
    else:
        y = x.astype(jnp.float32) * scale + b
        o_ref[...] = jnp.maximum(y, t).astype(o_ref.dtype)


# ---------------------------------------------------------------------------
# Wrapper
# ---------------------------------------------------------------------------
def frn_forward(x, gamma, beta, tau, eps, *, two_pass_col_tile=None):
    """FRN forward pass.

    x:     (N, C, H, W)
    gamma, beta, tau: (1, C, 1, 1)
    eps:   static scalar (non-learnable hyperparameter in the reference module)
    two_pass_col_tile: if set, forces the large-H*W two-pass path with this
                       column tile (mainly for testing).
    """
    N, C, H, W = x.shape
    rows, cols = N * C, H * W
    elem = jnp.dtype(x.dtype).itemsize
    sublane = {4: 8, 2: 16, 1: 32}.get(elem, 8)

    # eps is fixed / non-learnable: close over |eps| statically.
    # TODO(synk): a learnable (traced) eps would need an SMEM scalar input instead.
    eps_val = abs(float(jnp.asarray(eps, jnp.float32).ravel()[0]))
    inv_hw = 1.0 / float(cols)

    lp_compute = (x.dtype == jnp.bfloat16) and _bf16_elementwise_ok()

    # Flatten to (rows, cols); no padding and no output slice.
    x2 = x.reshape(rows, cols)

    # Pack per-row params into one (rows, 3) f32 array: [gamma, beta, tau].
    g = jnp.broadcast_to(gamma.reshape(1, C), (N, C)).reshape(rows)
    b = jnp.broadcast_to(beta.reshape(1, C), (N, C)).reshape(rows)
    t = jnp.broadcast_to(tau.reshape(1, C), (N, C)).reshape(rows)
    params = jnp.stack([g, b, t], axis=-1).astype(jnp.float32)

    # x-tile budget sized so double-buffered in+out DMA buffers plus f32
    # elementwise temporaries stay well inside v7x's 64 MiB VMEM.
    x_tile_budget = (4 << 20) if lp_compute else (3 << 20)
    row_bytes = cols * elem

    fused_ok = (two_pass_col_tile is None) and (sublane * row_bytes <= x_tile_budget)

    if fused_ok:
        tr = max(sublane, (x_tile_budget // row_bytes) // sublane * sublane)
        tr = min(tr, _round_up(rows, sublane))
        # Megacore: aim for >= 8 grid steps (>= 4 per TensorCore on v7x).
        if rows >= 8 * sublane:
            cap = _round_up(-(-rows // 8), sublane)
            tr = min(tr, max(sublane, cap))
        grid = (pl.cdiv(rows, tr),)

        tile_in = tr * cols * elem
        tile_f32 = tr * cols * 4
        footprint = 4 * tile_in + 2 * tile_f32 + (2 << 20)
        vmem_limit = int(min(max(footprint, 24 << 20), 48 << 20))

        kernel = functools.partial(_frn_fused_kernel, inv_hw=inv_hw,
                                   eps=eps_val, lp_compute=lp_compute)
        cost = pl.CostEstimate(
            flops=5 * rows * cols,
            transcendentals=rows,
            bytes_accessed=2 * rows * cols * elem + rows * 12,
        )
        out2 = pl.pallas_call(
            kernel,
            out_shape=jax.ShapeDtypeStruct((rows, cols), x.dtype),
            grid=grid,
            in_specs=[
                pl.BlockSpec((tr, cols), lambda i: (i, 0)),   # x row-tile
                pl.BlockSpec((tr, 3), lambda i: (i, 0)),      # packed params
            ],
            out_specs=pl.BlockSpec((tr, cols), lambda i: (i, 0)),
            compiler_params=pltpu.CompilerParams(
                dimension_semantics=("parallel",),
                vmem_limit_bytes=vmem_limit,
            ),
            cost_estimate=cost,
        )(x2, params)
        return out2.reshape(N, C, H, W)

    # ----- two-pass path (huge H*W or forced) -----
    tr = max(sublane, min(_round_up(rows, sublane), 64))
    if two_pass_col_tile is not None:
        tc = _round_up(int(two_pass_col_tile), 128)
    else:
        tc = max(128, (x_tile_budget // (tr * elem)) // 128 * 128)
    tc = min(tc, _round_up(cols, 128))
    grid = (pl.cdiv(rows, tr), pl.cdiv(cols, tc))

    tile_in = tr * tc * elem
    tile_f32 = tr * tc * 4
    vmem_limit = int(min(max(4 * tile_in + 2 * tile_f32 + (2 << 20), 24 << 20),
                         48 << 20))

    scale = pl.pallas_call(
        functools.partial(_frn_scale_kernel, inv_hw=inv_hw, eps=eps_val,
                          cols=cols, tc=tc),
        out_shape=jax.ShapeDtypeStruct((rows, 1), jnp.float32),
        grid=grid,
        in_specs=[
            pl.BlockSpec((tr, tc), lambda i, j: (i, j)),
            pl.BlockSpec((tr, 3), lambda i, j: (i, 0)),
        ],
        out_specs=pl.BlockSpec((tr, 1), lambda i, j: (i, 0)),
        scratch_shapes=[pltpu.VMEM((tr, 1), jnp.float32)],
        compiler_params=pltpu.CompilerParams(
            dimension_semantics=("parallel", "arbitrary"),
            vmem_limit_bytes=vmem_limit,
        ),
    )(x2, params)

    out2 = pl.pallas_call(
        functools.partial(_frn_norm_kernel, lp_compute=lp_compute),
        out_shape=jax.ShapeDtypeStruct((rows, cols), x.dtype),
        grid=grid,
        in_specs=[
            pl.BlockSpec((tr, tc), lambda i, j: (i, j)),
            pl.BlockSpec((tr, 1), lambda i, j: (i, 0)),
            pl.BlockSpec((tr, 3), lambda i, j: (i, 0)),
        ],
        out_specs=pl.BlockSpec((tr, tc), lambda i, j: (i, j)),
        compiler_params=pltpu.CompilerParams(
            dimension_semantics=("parallel", "parallel"),
            vmem_limit_bytes=vmem_limit,
        ),
    )(x2, scale, params)
    return out2.reshape(N, C, H, W)


def frn_reference(x, gamma, beta, tau, eps):
    """Pure-JAX reference mirroring the PyTorch forward (f32 math)."""
    xf = x.astype(jnp.float32)
    nu2 = jnp.mean(xf ** 2, axis=(2, 3), keepdims=True)
    xn = xf * jax.lax.rsqrt(nu2 + abs(float(eps)))
    return jnp.maximum(gamma.astype(jnp.float32) * xn + beta.astype(jnp.float32),
                       tau.astype(jnp.float32))


if __name__ == "__main__":
    key = jax.random.PRNGKey(0)
    k1, k2, k3, k4, k5 = jax.random.split(key, 5)
    eps = 1e-6

    # 1) Main case: N=2, C=4, H=W=16, f32, params at reset_parameters() values.
    N, C, H, W = 2, 4, 16, 16
    x = jax.random.normal(k1, (N, C, H, W), dtype=jnp.float32)
    gamma = jnp.ones((1, C, 1, 1), jnp.float32)
    beta = jnp.zeros((1, C, 1, 1), jnp.float32)
    tau = jnp.zeros((1, C, 1, 1), jnp.float32)
    out = jax.block_until_ready(frn_forward(x, gamma, beta, tau, eps))
    ref = frn_reference(x, gamma, beta, tau, eps)
    assert out.shape == (N, C, H, W)
    assert jnp.allclose(out, ref, atol=1e-5, rtol=1e-5), "fused f32 mismatch"

    # 2) Non-128-multiple spatial tail + non-trivial affine params (no-pad path).
    N2, C2, H2, W2 = 2, 3, 15, 15
    x2 = jax.random.normal(k2, (N2, C2, H2, W2), dtype=jnp.float32)
    g2 = jax.random.normal(k3, (1, C2, 1, 1), dtype=jnp.float32)
    b2 = 0.1 * jax.random.normal(k4, (1, C2, 1, 1), dtype=jnp.float32)
    t2 = 0.1 * jax.random.normal(k5, (1, C2, 1, 1), dtype=jnp.float32)
    out2 = jax.block_until_ready(frn_forward(x2, g2, b2, t2, eps))
    ref2 = frn_reference(x2, g2, b2, t2, eps)
    assert jnp.allclose(out2, ref2, atol=1e-4, rtol=1e-4), "unaligned-cols mismatch"

    # 3) bf16 I/O (bf16 elementwise path on v6e/v7x; f32 compute path on older chips).
    xb = x.astype(jnp.bfloat16)
    outb = jax.block_until_ready(frn_forward(xb, gamma, beta, tau, eps))
    refb = frn_reference(xb, gamma, beta, tau, eps)
    assert jnp.allclose(outb.astype(jnp.float32), refb, atol=5e-2, rtol=5e-2), \
        "bf16 mismatch"

    # 4) Forced two-pass (large-H*W) path with a partial final column chunk.
    out4 = jax.block_until_ready(
        frn_forward(x2, g2, b2, t2, eps, two_pass_col_tile=128))
    assert jnp.allclose(out4, ref2, atol=1e-4, rtol=1e-4), "two-pass mismatch"

    print("KERNEL_OK")
</pallas_src>

<mosaic_0001>
module attributes {stable_mosaic.version = 11 : i64} {
  func.func @_frn_fused_kernel(%arg0: i32, %arg1: memref<8x256xf32, #tpu.memory_space<vmem>>, %arg2: memref<8x3xf32, #tpu.memory_space<vmem>>, %arg3: memref<8x256xf32, #tpu.memory_space<vmem>>) attributes {dimension_semantics = [#tpu.dimension_semantics<parallel>], iteration_bounds = array<i64: 1>, scalar_prefetch = 0 : i64, scratch_operands = 0 : i64, tpu.core_type = #tpu.core_type<tc>, window_params = [{transform_indices = @transform_0, window_bounds = array<i64: 8, 256>}, {transform_indices = @transform_1, window_bounds = array<i64: 8, 3>}, {transform_indices = @transform_2, window_bounds = array<i64: 8, 256>}]} {
    %c0 = arith.constant 0 : index
    %c0_0 = arith.constant 0 : index
    %0 = vector.load %arg1[%c0, %c0_0] : memref<8x256xf32, #tpu.memory_space<vmem>>, vector<8x256xf32>
    %1 = arith.mulf %0, %0 : vector<8x256xf32>
    %cst = arith.constant dense<0.000000e+00> : vector<8xf32>
    %2 = vector.multi_reduction <add>, %1, %cst [1] : vector<8x256xf32> to vector<8xf32>
    %3 = vector.shape_cast %2 : vector<8xf32> to vector<8x1xf32>
    %cst_1 = arith.constant 3.906250e-03 : f32
    %4 = vector.broadcast %cst_1 : f32 to vector<8x1xf32>
    %5 = arith.mulf %3, %4 : vector<8x1xf32>
    %cst_2 = arith.constant 9.99999997E-7 : f32
    %6 = vector.broadcast %cst_2 : f32 to vector<8x1xf32>
    %7 = arith.addf %5, %6 : vector<8x1xf32>
    %8 = math.rsqrt %7 : vector<8x1xf32>
    %c0_3 = arith.constant 0 : index
    %c0_4 = arith.constant 0 : index
    %9 = vector.load %arg2[%c0_3, %c0_4] : memref<8x3xf32, #tpu.memory_space<vmem>>, vector<8x1xf32>
    %c0_5 = arith.constant 0 : index
    %c1 = arith.constant 1 : index
    %10 = vector.load %arg2[%c0_5, %c1] : memref<8x3xf32, #tpu.memory_space<vmem>>, vector<8x1xf32>
    %c0_6 = arith.constant 0 : index
    %c2 = arith.constant 2 : index
    %11 = vector.load %arg2[%c0_6, %c2] : memref<8x3xf32, #tpu.memory_space<vmem>>, vector<8x1xf32>
    %12 = arith.mulf %9, %8 : vector<8x1xf32>
    %13 = vector.broadcast %12 : vector<8x1xf32> to vector<8x256xf32>
    %14 = arith.mulf %0, %13 : vector<8x256xf32>
    %15 = vector.broadcast %10 : vector<8x1xf32> to vector<8x256xf32>
    %16 = arith.addf %14, %15 : vector<8x256xf32>
    %17 = vector.broadcast %11 : vector<8x1xf32> to vector<8x256xf32>
    %18 = arith.maximumf %16, %17 : vector<8x256xf32>
    %c0_7 = arith.constant 0 : index
    %c0_8 = arith.constant 0 : index
    %19 = vector.load %arg3[%c0_7, %c0_8] : memref<8x256xf32, #tpu.memory_space<vmem>>, vector<8x256xf32>
    tpu.vector_store %arg3[%c0_7, %c0_8], %18 {strides = array<i32>} : memref<8x256xf32, #tpu.memory_space<vmem>>, vector<8x256xf32>,
    return
  }
  func.func @transform_0(%arg0: i32) -> (i32, i32) {
    %c0_i32 = arith.constant 0 : i32
    %c0_i32_0 = arith.constant 0 : i32
    return %arg0, %c0_i32 : i32, i32
  }
  func.func @transform_1(%arg0: i32) -> (i32, i32) {
    %c0_i32 = arith.constant 0 : i32
    %c0_i32_0 = arith.constant 0 : i32
    return %arg0, %c0_i32 : i32, i32
  }
  func.func @transform_2(%arg0: i32) -> (i32, i32) {
    %c0_i32 = arith.constant 0 : i32
    %c0_i32_0 = arith.constant 0 : i32
    return %arg0, %c0_i32 : i32, i32
  }
}

</mosaic_0001>

<bundles_post_ra>
// kernel: tpu_custom_call.1
= control target key start
LH: loop header
LB: loop body
LE: loop exit
PB: predicated region body
PF: predicated region fallthrough
CT: control target
= control target key end

     0   :  { %7 = vsyncpa [#allocation3], 0  ;;  %s179_s0 = inlined_call_operand.hbm [shape: f32[8,256], index: 0, kind: input, shape index: {}]   ;;  %s180_s1 = inlined_call_operand.vmem [shape: f32[8,3], index: 1, kind: input, shape index: {}]   ;;  %s181_s2 = inlined_call_operand.hbm [shape: f32[8,256], index: 2, kind: output, shape index: {}]  }
   0x1   :  { %8 = vsyncpa [#allocation4], 0  ;;  %s132_s9 = smov [#allocation2]   ;;  %s84_s13 = scalar_lea.hbm %s179_s0, 256 }
   0x2   :  { %s15_s10 = sshll.u32 %s132_s9, 4  ;;  %p85_p0 = scmp.ne.s32.totalorder %s179_s0, %s84_s13  ;;  %s16_s10 = int_to_ptr.vmem [resolvable:$true] %s15_s10 }
   0x3   :  { %p88_p1 = scmp.lt.u32.totalorder %s84_s13, %s179_s0 }
   0x5   :  { %p90_p2 = pnand %p88_p1, %p85_p0 }
   0x7   :  { %93 = shalt.err (!%p90_p2)
}
   0x8   :  { %s94_s18 = scalar_lea.vmem %s16_s10, 256  ;;  %p99_p4 = scmp.lt.s32.totalorder %s16_s10, %s16_s10 }
   0x9   :  { %p95_p3 = scmp.ne.s32.totalorder %s16_s10, %s94_s18  ;;  %p100_p5 = scmp.lt.s32.totalorder %s94_s18, %s94_s18 }
   0xb   :  { %p101_p6 = por %p100_p5, %p99_p4 }
   0xd   :  { %p102_p7 = pnand %p101_p6, %p95_p3 }
   0xf   :  { %105 = shalt.err (!%p102_p7)
}
  0x10   :  { %18 = dma.hbm_to_vmem [thread:$0]  %s179_s0, 256, %s16_s10, [#allocation3]  }
  0x11   :  { %128 = dma.done.wait [#allocation3], 256  }
  0x12   :  { %129 = vsyncadd [#allocation3], 4294967040  ;;  %v24_v0 = vld [vmem:[#allocation2] sm:$0xff]  ;;  %v25_v1 = vld [vmem:[#allocation2 + $0x8] sm:$0xff]  ;;  %v133_v6 = vmov 1   ;;  %v134_v7 = vmov 0  }
  0x13   :  { %v26_v2 = vmul.f32 %v24_v0, %v24_v0  ;;  %v27_v3 = vmul.f32 %v25_v1, %v25_v1  ;;  %v34_v5 = vld [vmem:[%s180_s1] sm:$0xff]  ;;  %79 = vset.pattern.permute.xlu1 %v133_v6  ;;  %78 = vset.pattern.permute.xlu0 %v134_v7  ;;  %v135_v8 = vmov 2   ;;  %s136_s0 = smov [#allocation5]  }
  0x14   :  { %45 = vperm.xlu1 %79, %v34_v5   ;;  %s64_s1 = sshll.u32 %s136_s0, 4  ;;  %s65_s1 = int_to_ptr.vmem [resolvable:$true] %s64_s1 }
  0x15   :  { %v28_v4 = vadd.f32 %v27_v3, %v26_v2  ;;  %s106_s23 = scalar_lea.vmem %s65_s1, 256  ;;  %p111_p9 = scmp.lt.s32.totalorder %s65_s1, %s65_s1 }
  0x16   :  { %p107_p8 = scmp.ne.s32.totalorder %s65_s1, %s106_s23  ;;  %p112_p10 = scmp.lt.s32.totalorder %s106_s23, %s106_s23 }
  0x17   :  { %29 = vadd.xlane.f32.xlu0 %v28_v4 }
  0x18   :  { %80 = vset.pattern.permute.xlu1 %v135_v8  ;;  %p113_p11 = por %p112_p10, %p111_p9 }
  0x19   :  { %51 = vperm.xlu1 %80, %v34_v5  }
  0x1a   :  { %p114_p12 = pnand %p113_p11, %p107_p8 }
  0x93   :  { %v46_v14 = vpop.permute.xlu1 %45 }
  0x98   :  { %v52_v18 = vpop.permute.xlu1 %51 }
  0xa4   :  { %v30_v9 = vpop.xlane.xlu0 %29 }
  0xa5   :  { %v31_v10 = vmul.f32 0.00390625, %v30_v9 }
  0xa7   :  { %v32_v11 = vadd.f32 1e-06, %v31_v10 }
  0xa9   :  { %82 = vrsqrt.f32 %v32_v11 }
  0xb3   :  { %v83_v12 = vpop.eup %82 }
  0xb4   :  { %v35_v13 = vmul.f32 %v83_v12, %v34_v5 }
  0xb6   :  { %38 = vperm.xlu0 %78, %v35_v13  }
  0xba   :  { %81 = vset.pattern.permute.xlu0 %v135_v8 }
 0x135   :  { %v39_v15 = vpop.permute.xlu0 %38 }
 0x136   :  { %v41_v16 = vmul.f32 %v39_v15, %v24_v0  ;;  %v42_v17 = vmul.f32 %v39_v15, %v25_v1 }
 0x138   :  { %v48_v19 = vadd.f32 %v46_v14, %v41_v16  ;;  %v49_v20 = vadd.f32 %v46_v14, %v42_v17 }
 0x13a   :  { %v54_v21 = vmax.f32 %v48_v19, %v52_v18  ;;  %v55_v22 = vmax.f32 %v49_v20, %v52_v18 }
 0x13c   :  { %56 = vst [vmem:[#allocation5] sm:$0xff] %v54_v21  ;;  %57 = vst [vmem:[#allocation5 + $0x8] sm:$0xff] %v55_v22 }
 0x13d   :  { %117 = shalt.err (!%p114_p12)
}
 0x13e   :  { %s118_s26 = scalar_lea.hbm %s181_s2, 256 }
 0x13f   :  { %p119_p13 = scmp.ne.s32.totalorder %s181_s2, %s118_s26  ;;  %p122_p0 = scmp.lt.u32.totalorder %s118_s26, %s181_s2 }
 0x141   :  { %p124_p1 = pnand %p122_p0, %p119_p13 }
 0x143   :  { %127 = shalt.err (!%p124_p1)
}
 0x144   :  { %67 = dma.vmem_to_hbm [thread:$0]  %s65_s1, 256, %s181_s2, [#allocation4]  }
 0x145   :  { %130 = dma.done.wait [#allocation4], 256  }
 0x146   :  { %131 = vsyncadd [#allocation4], 4294967040 }
 0x147   :  { %71 = vsyncpa [#allocation3], 1 }
 0x148   :  { %72 = vsyncpa [#allocation4], 1 }

</bundles_post_ra>
